<compile_context>
chip_gen: v5e
topology: v5e:2x2
jax: 0.10.0
libtpu: 0.0.40
codegen_flags: <defaults>
</compile_context>

<pallas_src>
import functools

import jax
import jax.numpy as jnp
from jax import lax
from jax.experimental import pallas as pl
from jax.experimental.pallas import tpu as pltpu

_LANE = 128
_SUBLANE = 8
_MAX_H_BLOCK = 512          # multiple of 256: full MXU width on v6e/v7x
_INV_SQRT2 = 0.7071067811865476


def _round_up(n, m):
    return (n + m - 1) // m * m


def _vmem_limit_bytes():
    """Generation-aware VMEM budget with headroom for compiler scratch."""
    cap = 64 << 20  # conservative fallback (v7x physical VMEM)
    try:
        info = pltpu.get_tpu_info()
        cap = int(getattr(info, "vmem_capacity_bytes", cap))
    except Exception:
        pass
    # ~3/4 of physical: ~48 MiB on v7x, ~96 MiB on v5e/v6e (cap at 112 MiB).
    return int(max(min(cap * 3 // 4, 112 << 20), 32 << 20))


def _pick_tm(d_in, th, d_out, out_itemsize, vmem_limit):
    """Largest row tile whose per-step VMEM footprint fits the budget."""
    headroom = 8 << 20
    # bf16 weight blocks + f32 bias blocks, double buffered by the pipeline.
    w_bytes = 2 * (d_in * th + th * d_out) * 2 + 2 * (th + d_out) * 4
    for tm in (1024, 512, 256, 128):
        t_bytes = (
            2 * tm * d_in * 4              # x tiles (f32 in), double buffered
            + 2 * tm * d_out * out_itemsize  # output tiles, double buffered
            + tm * d_out * 4               # f32 accumulator scratch
            + 3 * tm * th * 4              # h intermediate (f32 + bf16 copy + slack)
        )
        if w_bytes + t_bytes + headroom <= vmem_limit:
            return tm
    return 128


def prepare_ffn_params(w1, b1, w2, b2, compute_dtype=jnp.bfloat16):
    """One-time setup: pad d_hid to the H-block granularity and cast weights.

    Done once at model setup, NOT per forward call (weight bytes dominate HBM
    traffic for real FFN sizes).  Zero padding is mathematically inert:
    gelu(0) = 0 and the padded w2 rows are zero.
    """
    d_in, d_hid = w1.shape
    d_out = w2.shape[1]
    if d_hid <= _MAX_H_BLOCK:
        d_hid_p = _round_up(d_hid, _LANE)       # single H step
    else:
        d_hid_p = _round_up(d_hid, _MAX_H_BLOCK)  # tiled over H in 512 chunks
    w1_p = jnp.pad(w1, ((0, 0), (0, d_hid_p - d_hid))).astype(compute_dtype)
    b1_p = jnp.pad(b1, (0, d_hid_p - d_hid)).astype(jnp.float32).reshape(1, d_hid_p)
    w2_p = jnp.pad(w2, ((0, d_hid_p - d_hid), (0, 0))).astype(compute_dtype)
    b2_p = b2.astype(jnp.float32).reshape(1, d_out)
    return w1_p, b1_p, w2_p, b2_p


def ffn_kernel(x_ref, w1_ref, b1_ref, w2_ref, b2_ref, o_ref, acc_ref):
    h_idx = pl.program_id(1)

    @pl.when(h_idx == 0)
    def _init():
        acc_ref[...] = jnp.zeros_like(acc_ref)

    # First linear layer: bf16 MXU operands, f32 accumulation.
    x_bf = x_ref[...].astype(jnp.bfloat16)
    h = jnp.dot(x_bf, w1_ref[...], preferred_element_type=jnp.float32)
    h = h + b1_ref[...]                     # (1, th) broadcasts over rows
    # Exact (erf-based) GELU, matching torch.nn.GELU() default.
    h = 0.5 * h * (1.0 + lax.erf(h * _INV_SQRT2))
    # Second linear layer: accumulate this H-block's contribution in f32.
    acc_ref[...] += jnp.dot(h.astype(jnp.bfloat16), w2_ref[...],
                            preferred_element_type=jnp.float32)

    @pl.when(h_idx == pl.num_programs(1) - 1)
    def _finalize():
        o_ref[...] = (acc_ref[...] + b2_ref[...]).astype(o_ref.dtype)


@jax.jit
def feed_forward_network(x, w1_p, b1_p, w2_p, b2_p):
    """x: (M, d_in) f32/bf16.  w*/b* must come from prepare_ffn_params."""
    M, d_in = x.shape
    d_hid_p = w1_p.shape[1]
    d_out = w2_p.shape[1]

    # Hidden-dim block: full (<=512) hidden dim, else 512-wide slices.
    th = d_hid_p if d_hid_p <= _MAX_H_BLOCK else _MAX_H_BLOCK
    n_h = d_hid_p // th

    vmem_limit = _vmem_limit_bytes()
    out_itemsize = jnp.dtype(x.dtype).itemsize
    tm = _pick_tm(d_in, th, d_out, out_itemsize, vmem_limit)

    # Don't pad tiny batches up to tm; keep the row tile a multiple of 8.
    tm_eff = min(tm, _round_up(M, _SUBLANE))
    # v7x megacore: make sure the parallel row axis has >= 2 steps when M allows
    # so both TensorCores get work (free on single-TC v5e/v6e).
    while pl.cdiv(M, tm_eff) < 2 and tm_eff > _SUBLANE:
        tm_eff = max(_SUBLANE, _round_up(tm_eff // 2, _SUBLANE))
    grid_rows = pl.cdiv(M, tm_eff)

    # TODO(synk): for very large d_in, additionally tile the d_in reduction.
    return pl.pallas_call(
        ffn_kernel,
        out_shape=jax.ShapeDtypeStruct((M, d_out), x.dtype),
        grid_spec=pltpu.PrefetchScalarGridSpec(
            num_scalar_prefetch=0,
            grid=(grid_rows, n_h),
            in_specs=[
                # x: row-tiled; same block across the H axis -> fetched once per row tile.
                pl.BlockSpec((tm_eff, d_in), lambda i, h: (i, 0)),
                # w1 columns / b1 slice / w2 rows: pipelined per H-block.
                pl.BlockSpec((d_in, th), lambda i, h: (0, h)),
                pl.BlockSpec((1, th), lambda i, h: (0, h)),
                pl.BlockSpec((th, d_out), lambda i, h: (h, 0)),
                pl.BlockSpec((1, d_out), lambda i, h: (0, 0)),
            ],
            out_specs=pl.BlockSpec((tm_eff, d_out), lambda i, h: (i, 0)),
            scratch_shapes=[pltpu.VMEM((tm_eff, d_out), jnp.float32)],
        ),
        compiler_params=pltpu.CompilerParams(
            dimension_semantics=("parallel", "arbitrary"),
            vmem_limit_bytes=vmem_limit,
        ),
    )(x, w1_p, b1_p, w2_p, b2_p)


def feed_forward_reference(x, w1, b1, w2, b2):
    h = x @ w1 + b1
    h = 0.5 * h * (1.0 + lax.erf(h * _INV_SQRT2))
    return h @ w2 + b2


def _run_case(key, M, d_in, d_hid, d_out, atol=5e-2, rtol=5e-2):
    k1, k2, k3, k4, k5 = jax.random.split(key, 5)
    x = jax.random.normal(k1, (M, d_in), dtype=jnp.float32)
    w1 = jax.random.normal(k2, (d_in, d_hid), dtype=jnp.float32) / jnp.sqrt(d_in)
    b1 = jax.random.normal(k3, (d_hid,), dtype=jnp.float32) * 0.01
    w2 = jax.random.normal(k4, (d_hid, d_out), dtype=jnp.float32) / jnp.sqrt(d_hid)
    b2 = jax.random.normal(k5, (d_out,), dtype=jnp.float32) * 0.01

    params = prepare_ffn_params(w1, b1, w2, b2)          # one-time setup
    out = jax.block_until_ready(feed_forward_network(x, *params))
    ref = feed_forward_reference(x, w1, b1, w2, b2)
    assert out.shape == (M, d_out), (out.shape, (M, d_out))
    assert jnp.allclose(out, ref, atol=atol, rtol=rtol), (
        float(jnp.max(jnp.abs(out - ref))))
    return out


if __name__ == "__main__":
    key = jax.random.PRNGKey(0)
    k_a, k_b, k_c = jax.random.split(key, 3)

    # Main case: shapes consistent with the module (input 32 -> hidden 128 -> out 32).
    _run_case(k_a, M=64, d_in=32, d_hid=128, d_out=32)

    # Batch not a multiple of the row tile / 8 (partial last block, no row padding).
    _run_case(k_b, M=50, d_in=32, d_hid=128, d_out=32)

    # Exercise the hidden-dim-tiled accumulator path (d_hid > 512 -> 2 H steps)
    # with unaligned feature dims.
    _run_case(k_c, M=96, d_in=48, d_hid=1024, d_out=40)

    print("KERNEL_OK")
</pallas_src>

<mosaic_0001>
module attributes {stable_mosaic.version = 11 : i64} {
  func.func @ffn_kernel(%arg0: i32, %arg1: i32, %arg2: memref<32x32xf32, #tpu.memory_space<vmem>>, %arg3: memref<32x128xbf16, #tpu.memory_space<vmem>>, %arg4: memref<1x128xf32, #tpu.memory_space<vmem>>, %arg5: memref<128x32xbf16, #tpu.memory_space<vmem>>, %arg6: memref<1x32xf32, #tpu.memory_space<vmem>>, %arg7: memref<32x32xf32, #tpu.memory_space<vmem>>, %arg8: memref<32x32xf32, #tpu.memory_space<vmem>>) attributes {dimension_semantics = [#tpu.dimension_semantics<parallel>, #tpu.dimension_semantics<arbitrary>], iteration_bounds = array<i64: 2, 1>, scalar_prefetch = 0 : i64, scratch_operands = 1 : i64, tpu.core_type = #tpu.core_type<tc>, window_params = [{transform_indices = @transform_0, window_bounds = array<i64: 32, 32>}, {transform_indices = @transform_1, window_bounds = array<i64: 32, 128>}, {transform_indices = @transform_2, window_bounds = array<i64: 1, 128>}, {transform_indices = @transform_3, window_bounds = array<i64: 128, 32>}, {pipeline_mode = #tpu.pipeline_mode<synchronous>, transform_indices = @transform_4, window_bounds = array<i64: 1, 32>}, {transform_indices = @transform_5, window_bounds = array<i64: 32, 32>}]} {
    %c0_i32 = arith.constant 0 : i32
    %0 = arith.cmpi eq, %arg1, %c0_i32 : i32
    %1 = arith.extui %0 : i1 to i32
    %c0_i32_0 = arith.constant 0 : i32
    %2 = arith.cmpi ne, %1, %c0_i32_0 : i32
    scf.if %2 {
      %cst_18 = arith.constant 0.000000e+00 : f32
      %27 = vector.broadcast %cst_18 : f32 to vector<32x32xf32>
      %c0_19 = arith.constant 0 : index
      %c0_20 = arith.constant 0 : index
      %28 = vector.load %arg8[%c0_19, %c0_20] : memref<32x32xf32, #tpu.memory_space<vmem>>, vector<32x32xf32>
      tpu.vector_store %arg8[%c0_19, %c0_20], %27 {strides = array<i32>} : memref<32x32xf32, #tpu.memory_space<vmem>>, vector<32x32xf32>,
    } else {
    }
    %c0 = arith.constant 0 : index
    %c0_1 = arith.constant 0 : index
    %3 = vector.load %arg2[%c0, %c0_1] : memref<32x32xf32, #tpu.memory_space<vmem>>, vector<32x32xf32>
    %4 = arith.truncf %3 : vector<32x32xf32> to vector<32x32xbf16>
    %c0_2 = arith.constant 0 : index
    %c0_3 = arith.constant 0 : index
    %5 = vector.load %arg3[%c0_2, %c0_3] : memref<32x128xbf16, #tpu.memory_space<vmem>>, vector<32x128xbf16>
    %cst = arith.constant dense<0.000000e+00> : vector<32x128xf32>
    %6 = tpu.matmul %4, %5, %cst {dimension_numbers = #tpu.dot_dimension_numbers<[1], [0], [0], [1], [0, 0, 1, 1], [], []>} : vector<32x32xbf16>, vector<32x128xbf16>, vector<32x128xf32> -> vector<32x128xf32>
    %c0_4 = arith.constant 0 : index
    %c0_5 = arith.constant 0 : index
    %7 = vector.load %arg4[%c0_4, %c0_5] : memref<1x128xf32, #tpu.memory_space<vmem>>, vector<1x128xf32>
    %8 = vector.broadcast %7 : vector<1x128xf32> to vector<32x128xf32>
    %9 = arith.addf %6, %8 : vector<32x128xf32>
    %cst_6 = arith.constant 5.000000e-01 : f32
    %10 = vector.broadcast %cst_6 : f32 to vector<32x128xf32>
    %11 = arith.mulf %10, %9 : vector<32x128xf32>
    %cst_7 = arith.constant 0.707106769 : f32
    %12 = vector.broadcast %cst_7 : f32 to vector<32x128xf32>
    %13 = arith.mulf %9, %12 : vector<32x128xf32>
    %14 = math.erf %13 : vector<32x128xf32>
    %cst_8 = arith.constant 1.000000e+00 : f32
    %15 = vector.broadcast %cst_8 : f32 to vector<32x128xf32>
    %16 = arith.addf %15, %14 : vector<32x128xf32>
    %17 = arith.mulf %11, %16 : vector<32x128xf32>
    %c0_9 = arith.constant 0 : index
    %c0_10 = arith.constant 0 : index
    %18 = vector.load %arg8[%c0_9, %c0_10] : memref<32x32xf32, #tpu.memory_space<vmem>>, vector<32x32xf32>
    %19 = arith.truncf %17 : vector<32x128xf32> to vector<32x128xbf16>
    %c0_11 = arith.constant 0 : index
    %c0_12 = arith.constant 0 : index
    %20 = vector.load %arg5[%c0_11, %c0_12] : memref<128x32xbf16, #tpu.memory_space<vmem>>, vector<128x32xbf16>
    %cst_13 = arith.constant dense<0.000000e+00> : vector<32x32xf32>
    %21 = tpu.matmul %19, %20, %cst_13 {dimension_numbers = #tpu.dot_dimension_numbers<[1], [0], [0], [1], [0, 0, 1, 1], [], []>} : vector<32x128xbf16>, vector<128x32xbf16>, vector<32x32xf32> -> vector<32x32xf32>
    %22 = arith.addf %18, %21 : vector<32x32xf32>
    %c0_14 = arith.constant 0 : index
    %c0_15 = arith.constant 0 : index
    %23 = vector.load %arg8[%c0_14, %c0_15] : memref<32x32xf32, #tpu.memory_space<vmem>>, vector<32x32xf32>
    tpu.vector_store %arg8[%c0_14, %c0_15], %22 {strides = array<i32>} : memref<32x32xf32, #tpu.memory_space<vmem>>, vector<32x32xf32>,
    %c0_i32_16 = arith.constant 0 : i32
    %24 = arith.cmpi eq, %arg1, %c0_i32_16 : i32
    %25 = arith.extui %24 : i1 to i32
    %c0_i32_17 = arith.constant 0 : i32
    %26 = arith.cmpi ne, %25, %c0_i32_17 : i32
    scf.if %26 {
      %c0_18 = arith.constant 0 : index
      %c0_19 = arith.constant 0 : index
      %27 = vector.load %arg8[%c0_18, %c0_19] : memref<32x32xf32, #tpu.memory_space<vmem>>, vector<32x32xf32>
      %c0_20 = arith.constant 0 : index
      %c0_21 = arith.constant 0 : index
      %28 = vector.load %arg6[%c0_20, %c0_21] : memref<1x32xf32, #tpu.memory_space<vmem>>, vector<1x32xf32>
      %29 = vector.broadcast %28 : vector<1x32xf32> to vector<32x32xf32>
      %30 = arith.addf %27, %29 : vector<32x32xf32>
      %c0_22 = arith.constant 0 : index
      %c0_23 = arith.constant 0 : index
      %31 = vector.load %arg7[%c0_22, %c0_23] : memref<32x32xf32, #tpu.memory_space<vmem>>, vector<32x32xf32>
      tpu.vector_store %arg7[%c0_22, %c0_23], %30 {strides = array<i32>} : memref<32x32xf32, #tpu.memory_space<vmem>>, vector<32x32xf32>,
    } else {
    }
    return
  }
  func.func @transform_0(%arg0: i32, %arg1: i32) -> (i32, i32) {
    %c0_i32 = arith.constant 0 : i32
    %c0_i32_0 = arith.constant 0 : i32
    return %arg0, %c0_i32 : i32, i32
  }
  func.func @transform_1(%arg0: i32, %arg1: i32) -> (i32, i32) {
    %c0_i32 = arith.constant 0 : i32
    %c0_i32_0 = arith.constant 0 : i32
    return %c0_i32, %arg1 : i32, i32
  }
  func.func @transform_2(%arg0: i32, %arg1: i32) -> (i32, i32) {
    %c0_i32 = arith.constant 0 : i32
    %c0_i32_0 = arith.constant 0 : i32
    return %c0_i32, %arg1 : i32, i32
  }
  func.func @transform_3(%arg0: i32, %arg1: i32) -> (i32, i32) {
    %c0_i32 = arith.constant 0 : i32
    %c0_i32_0 = arith.constant 0 : i32
    return %arg1, %c0_i32 : i32, i32
  }
  func.func @transform_4(%arg0: i32, %arg1: i32) -> (i32, i32) {
    %c0_i32 = arith.constant 0 : i32
    %c0_i32_0 = arith.constant 0 : i32
    %c0_i32_1 = arith.constant 0 : i32
    return %c0_i32, %c0_i32_0 : i32, i32
  }
  func.func @transform_5(%arg0: i32, %arg1: i32) -> (i32, i32) {
    %c0_i32 = arith.constant 0 : i32
    %c0_i32_0 = arith.constant 0 : i32
    return %arg0, %c0_i32 : i32, i32
  }
}

</mosaic_0001>

<bundles_post_ra>
// kernel: feed_forward_network.1
= control target key start
LH: loop header
LB: loop body
LE: loop exit
PB: predicated region body
PF: predicated region fallthrough
CT: control target
= control target key end

     0   :  { %s922_s18 = smov 0   ;;  %s924_s19 = smov 0   ;;  %s1096_s0 = inlined_call_operand.vmem [shape: f32[64,32], index: 0, kind: input, shape index: {}]   ;;  %s1097_s1 = inlined_call_operand.vmem [shape: bf16[32,128], index: 1, kind: input, shape index: {}]   ;;  %s1098_s2 = inlined_call_operand.vmem [shape: f32[1,128], index: 2, kind: input, shape index: {}]   ;;  %s1099_s3 = inlined_call_operand.vmem [shape: bf16[128,32], index: 3, kind: input, shape index: {}]   ;;  %s1100_s4 = inlined_call_operand.vmem [shape: f32[1,32], index: 4, kind: input, shape index: {}]   ;;  %s1101_s5 = inlined_call_operand.vmem [shape: f32[64,32], index: 5, kind: output, shape index: {}]  }
   0x1   :  { %s926_s20 = smov 0  }
   0x2 LB: > { %s27_s21 = sadd.s32 1, %s885_s19  ;;  %p761_p0 = scmp.ge.s32.totalorder %s889_s20, 1  ;;  %s889_s20 = sphi %s926_s20, %s15_s20   ;;  %s885_s19 = sphi %s924_s19, %s1103_s19   ;;  %s881_s18 = sphi %s922_s18, %s1102_s18  }
   0x3   : > { %p29_p1 = scmp.ge.s32.totalorder %s27_s21, 2  ;;  %p228_p2 = scmp.lt.s32.totalorder %s889_s20, 3 }
   0x5   : > { %s1105_s21 = smov (%p29_p1, %s27_s21), 0  ;;  %p229_p3 = pnand %p761_p0, %p228_p2 }
   0x6   : > { %s762_s24 = sshll.u32 (!%p229_p3), %s881_s18, 2 }
   0x7   : > { %232 = sbr.rel (%p229_p3) target bundleno = 378 (0x17a), region = 40  ;;  %p269_p4 = scmp.lt.s32.totalorder (!%p229_p3), %s762_s24, 7 }
   0xc   : > { %v815_v0 = vld [vmem:[%s1097_s1 + $0x8] sm:$0xff]  ;;  %v814_v1 = vld [vmem:[%s1097_s1] sm:$0xff]  ;;  %s1107_s24 = smov (!%p269_p4, %s762_s24), 7  ;;  %vm298_vm0 = vcmask 261120   ;;  %v823_v10 = vld [vmem:[%s1099_s3 + $0x38] sm:$0xff] }
   0xd   : > { %342 = vmatpush.bf16.msra.mxu0 %v815_v0  ;;  %s763_s27 = sshll.u32 %s1107_s24, 3  ;;  %v857_v8 = vld [vmem:[%s1098_s2] ss:$0 sm:$0xff]  ;;  %601 = vmatpush.bf16.msra.mxu1 %v823_v10  ;;  %v822_v13 = vld [vmem:[%s1099_s3 + $0x30] sm:$0xff]  ;;  %v821_v17 = vld [vmem:[%s1099_s3 + $0x28] sm:$0xff] }
   0xe   : > { %s272_s30 = scalar_lea.vmem %s1096_s0, %s763_s27  ;;  %824 = vmatpush.bf16.msra.mxu2 %v823_v10  ;;  %v820_v23 = vld [vmem:[%s1099_s3 + $0x20] sm:$0xff]  ;;  %v819_v30 = vld [vmem:[%s1099_s3 + $0x18] sm:$0xff]  ;;  %v818_v39 = vld [vmem:[%s1099_s3 + $0x10] sm:$0xff]  ;;  %s291_s8 = scalar_lea.vmem %s1101_s5, %s763_s27 }
   0xf   : > { %v303_v2 = vld [vmem:[%s272_s30] sm:$0xff]  ;;  %v304_v3 = vld [vmem:[%s272_s30 + $0x8] sm:$0xff]  ;;  %v305_v5 = vld [vmem:[%s272_s30 + $0x10] sm:$0xff] }
  0x10   : > { %v307_v4 = vpack.c.bf16 %v304_v3, %v303_v2  ;;  %v306_v6 = vld [vmem:[%s272_s30 + $0x18] sm:$0xff]  ;;  %v817_v44 = vld [vmem:[%s1099_s3 + $0x8] sm:$0xff]  ;;  %v816_v55 = vld [vmem:[%s1099_s3] sm:$0xff] }
  0x11   : > { %343 = vmatpush.bf16.msra.mxu0 %v814_v1  ;;  %v308_v7 = vpack.c.bf16 %v306_v6, %v305_v5  ;;  %602 = vmatpush.bf16.msra.mxu1 %v822_v13 }
  0x12   : > { %825 = vmatpush.bf16.msra.mxu2 %v822_v13 }
  0x14   : > { %774 = vmatmul.msk.bf16.vlgmr.msra.gmra.mxu0 %vm298_vm0, %v307_v4 }
  0x15   : > { %603 = vmatpush.bf16.msra.mxu1 %v821_v17 }
  0x16   : > { %826 = vmatpush.bf16.msra.mxu2 %v821_v17 }
  0x19   : > { %604 = vmatpush.bf16.msra.mxu1 %v820_v23 }
  0x1a   : > { %827 = vmatpush.bf16.msra.mxu2 %v820_v23 }
  0x1d   : > { %605 = vmatpush.bf16.msra.mxu1 %v819_v30 }
  0x1e   : > { %828 = vmatpush.bf16.msra.mxu2 %v819_v30 }
  0x21   : > { %606 = vmatpush.bf16.msra.mxu1 %v818_v39 }
  0x22   : > { %829 = vmatpush.bf16.msra.mxu2 %v818_v39 }
  0x24   : > { %775 = vmatmul.msk.bf16.gmra.mxu0 %vm298_vm0, %v308_v7 }
  0x25   : > { %607 = vmatpush.bf16.msra.mxu1 %v817_v44 }
  0x26   : > { %830 = vmatpush.bf16.msra.mxu2 %v817_v44 }
  0x29   : > { %608 = vmatpush.bf16.msra.mxu1 %v816_v55 }
  0x2a   : > { %831 = vmatpush.bf16.msra.mxu2 %v816_v55 }
  0x91   : > { %v345_v9 = vpop.f32.mrf.mxu0 }
  0x92   : > { %v962_v11 = vadd.f32 %v857_v8, %v345_v9 }
  0x94   : > { %v965_v12 = vmul.f32 0.70710677, %v962_v11 }
  0x96   : > { %v363_v14 = vmul.f32 %v965_v12, %v965_v12 }
  0x98   : > { %v972_v15 = vmin.f32 %v363_v14, 16.0 }
  0x99   : > { %v347_v16 = vpop.f32.mrf.mxu0 }
  0x9a   : > { %v365_v18 = vmul.f32 2.1237322e-06, %v972_v15  ;;  %v978_v19 = vadd.f32 %v857_v8, %v347_v16  ;;  %v376_v20 = vmul.f32 3.8918573e-05, %v972_v15 }
  0x9c   : > { %v366_v21 = vadd.f32 0.00028619796, %v365_v18  ;;  %v982_v22 = vmul.f32 0.70710677, %v978_v19  ;;  %v377_v24 = vadd.f32 0.001143296, %v376_v20 }
  0x9e   : > { %v403_v25 = vmul.f32 %v982_v22, %v982_v22  ;;  %v378_v26 = vmul.f32 %v377_v24, %v972_v15  ;;  %v367_v27 = vmul.f32 %v366_v21, %v972_v15 }
  0xa0   : > { %v991_v28 = vmin.f32 %v403_v25, 16.0  ;;  %v379_v31 = vadd.f32 0.014752088, %v378_v26  ;;  %v368_v36 = vadd.f32 0.0036580483, %v367_v27 }
  0xa1   : > { %v350_v29 = vpop.f32.mrf.mxu0 }
  0xa2   : > { %v405_v32 = vmul.f32 2.1237322e-06, %v991_v28  ;;  %v997_v33 = vadd.f32 %v857_v8, %v350_v29  ;;  %v416_v34 = vmul.f32 3.8918573e-05, %v991_v28  ;;  %v380_v35 = vmul.f32 %v379_v31, %v972_v15 }
  0xa3   : > { %v369_v46 = vmul.f32 %v368_v36, %v972_v15 }
  0xa4   : > { %v406_v37 = vadd.f32 0.00028619796, %v405_v32  ;;  %v1002_v38 = vmul.f32 0.70710677, %v997_v33  ;;  %v381_v40 = vadd.f32 0.112945676, %v380_v35 }
  0xa5   : > { %v417_v42 = vadd.f32 0.001143296, %v416_v34  ;;  %v370_v58 = vadd.f32 0.05243302, %v369_v46 }
  0xa6   : > { %v407_v41 = vmul.f32 %v406_v37, %v991_v28  ;;  %v443_v43 = vmul.f32 %v1002_v38, %v1002_v38  ;;  %v382_v45 = vmul.f32 %v381_v40, %v972_v15 }
  0xa7   : > { %v418_v48 = vmul.f32 %v417_v42, %v991_v28  ;;  %v371_v3 = vmul.f32 %v370_v58, %v972_v15 }
  0xa8   : > { %v408_v47 = vadd.f32 0.0036580483, %v407_v41  ;;  %v1016_v49 = vmin.f32 %v443_v43, 16.0  ;;  %v383_v51 = vadd.f32 0.4994258, %v382_v45 }
  0xa9   : > { %v352_v50 = vpop.f32.mrf.mxu0  ;;  %v419_v53 = vadd.f32 0.014752088, %v418_v48  ;;  %v372_v16 = vadd.f32 0.18741608, %v371_v3 }
  0xaa   : > { %v1018_v52 = vadd.f32 %v857_v8, %v352_v50  ;;  %v445_v54 = vmul.f32 2.1237322e-06, %v1016_v49  ;;  %v384_v56 = vmul.f32 %v383_v51, %v972_v15  ;;  %v456_v57 = vmul.f32 3.8918573e-05, %v1016_v49 }
  0xab   : > { %v409_v59 = vmul.f32 %v408_v47, %v991_v28  ;;  %v420_v60 = vmul.f32 %v419_v53, %v991_v28  ;;  %v373_v32 = vmul.f32 %v372_v16, %v972_v15 }
  0xac   : > { %v446_v61 = vadd.f32 0.00028619796, %v445_v54  ;;  %v1029_v62 = vmul.f32 0.70710677, %v1018_v52  ;;  %v385_v63 = vadd.f32 1.0, %v384_v56 }
  0xad   : > { %v421_v0 = vadd.f32 0.112945676, %v420_v60  ;;  %v457_v1 = vadd.f32 0.001143296, %v456_v57  ;;  %v410_v4 = vadd.f32 0.05243302, %v409_v59 }
  0xae   : > { %v483_v2 = vmul.f32 %v1029_v62, %v1029_v62  ;;  %859 = vrcp.f32 %v385_v63  ;;  %v447_v6 = vmul.f32 %v446_v61, %v1016_v49  ;;  %v397_v37 = vand.u32 2147483648, %v385_v63 }
  0xaf   : > { %v422_v5 = vmul.f32 %v421_v0, %v991_v28  ;;  %v458_v8 = vmul.f32 %v457_v1, %v1016_v49  ;;  %v411_v17 = vmul.f32 %v410_v4, %v991_v28  ;;  %v395_v43 = vand.u32 2147483647, %v385_v63 }
  0xb0   : > { %v1036_v7 = vmin.f32 %v483_v2, 16.0  ;;  %v448_v21 = vadd.f32 0.0036580483, %v447_v6  ;;  %vm391_vm2 = vweird.f32 %v385_v63  ;;  %v374_v47 = vadd.f32 1.1283791, %v373_v32 }
  0xb1   : > { %v423_v9 = vadd.f32 0.4994258, %v422_v5  ;;  %v459_v13 = vadd.f32 0.014752088, %v458_v8  ;;  %v412_v35 = vadd.f32 0.18741608, %v411_v17 }
  0xb2   : > { %v485_v10 = vmul.f32 2.1237322e-06, %v1036_v7  ;;  %v496_v14 = vmul.f32 3.8918573e-05, %v1036_v7  ;;  %v449_v36 = vmul.f32 %v448_v21, %v1016_v49  ;;  %v398_v55 = vor.u32 1.1754944e-38, %v397_v37 }
  0xb3   : > { %v424_v18 = vmul.f32 %v423_v9, %v991_v28  ;;  %v460_v24 = vmul.f32 %v459_v13, %v1016_v49  ;;  %v413_v15 = vmul.f32 %v412_v35, %v991_v28  ;;  %vm396_vm4 = vcmp.eq.f32.partialorder %v395_v43, 8.507059e+37 }
  0xb4   : > { %v860_v20 = vpop.eup %859  ;;  %v486_v23 = vadd.f32 0.00028619796, %v485_v10  ;;  %v497_v25 = vadd.f32 0.001143296, %v496_v14  ;;  %v450_v48 = vadd.f32 0.05243302, %v449_v36  ;;  %v375_v61 = vmul.f32 %v374_v47, %v965_v12 }
  0xb5   : > { %v387_v26 = vmul.f32 %v860_v20, %v385_v63  ;;  %v425_v27 = vadd.f32 1.0, %v424_v18  ;;  %v461_v30 = vadd.f32 0.112945676, %v460_v24  ;;  %vm392_vm1 = vweird.f32 %v860_v20 }
  0xb6   : > { %v487_v29 = vmul.f32 %v486_v23, %v1036_v7  ;;  %v498_v31 = vmul.f32 %v497_v25, %v1036_v7  ;;  %vm393_vm3 = vmor %vm391_vm2, %vm392_vm1  ;;  %v414_v63 = vadd.f32 1.1283791, %v413_v15  ;;  %v451_v28 = vmul.f32 %v450_v48, %v1016_v49 }
  0xb7   : > { %v388_v34 = vsub.f32 1.0, %v387_v26  ;;  %861 = vrcp.f32 %v425_v27  ;;  %v462_v39 = vmul.f32 %v461_v30, %v1016_v49  ;;  %v435_v2 = vand.u32 2147483647, %v425_v27 }
  0xb8   : > { %v488_v40 = vadd.f32 0.0036580483, %v487_v29  ;;  %v499_v42 = vadd.f32 0.014752088, %v498_v31  ;;  %v437_v3 = vand.u32 2147483648, %v425_v27  ;;  %vm431_vm6 = vweird.f32 %v425_v27 }
  0xb9   : > { %v389_v41 = vmul.f32 %v860_v20, %v388_v34  ;;  %v463_v44 = vadd.f32 0.4994258, %v462_v39  ;;  %v891_v10 = vmov 0.0   ;;  %v415_v12 = vmul.f32 %v414_v63, %v982_v22 }
  0xba   : > { %v500_v46 = vmul.f32 %v499_v42, %v1036_v7  ;;  %v489_v53 = vmul.f32 %v488_v40, %v1036_v7  ;;  %299 = vst.msk [vmem:[#allocation2] sm:$0xff] %vm298_vm0, %v891_v10  ;;  %v452_v13 = vadd.f32 0.18741608, %v451_v28  ;;  %vm436_vm8 = vcmp.eq.f32.partialorder %v435_v2, 8.507059e+37 }
  0xbb   : > { %v390_v45 = vadd.f32 %v860_v20, %v389_v41  ;;  %v464_v50 = vmul.f32 %v463_v44, %v1016_v49  ;;  %v438_v14 = vor.u32 1.1754944e-38, %v437_v3  ;;  %300 = vst.msk [vmem:[#allocation2 + $0x8] sm:$0xff] %vm298_vm0, %v891_v10  ;;  %v355_v31 = vmul.f32 0.5, %v962_v11 }
  0xbc   : > { %v501_v56 = vadd.f32 0.112945676, %v500_v46  ;;  %v490_v1 = vadd.f32 0.05243302, %v489_v53  ;;  %301 = vst.msk [vmem:[#allocation2 + $0x10] sm:$0xff] %vm298_vm0, %v891_v10  ;;  %v453_v22 = vmul.f32 %v452_v13, %v1016_v49  ;;  %v356_v32 = vmul.f32 0.5, %v978_v19 }
  0xbd   : > { %v862_v51 = vpop.eup %861  ;;  %v394_v54 = vsel %vm393_vm3, %v860_v20, %v390_v45  ;;  %v465_v59 = vadd.f32 1.0, %v464_v50  ;;  %302 = vst.msk [vmem:[#allocation2 + $0x18] sm:$0xff] %vm298_vm0, %v891_v10  ;;  %v357_v63 = vmul.f32 0.5, %v997_v33  ;;  %v358_v28 = vmul.f32 0.5, %v1018_v52 }
  0xbe   : > { %v427_v57 = vmul.f32 %v862_v51, %v425_v27  ;;  %v399_v58 = vsel %vm396_vm4, %v398_v55, %v394_v54  ;;  %v502_v60 = vmul.f32 %v501_v56, %v1036_v7  ;;  %vm432_vm5 = vweird.f32 %v862_v51 }
  0xbf   : > { %863 = vrcp.f32 %v465_v59  ;;  %v400_v4 = vmul.f32 %v399_v58, %v375_v61  ;;  %vm433_vm7 = vmor %vm431_vm6, %vm432_vm5  ;;  %v491_v16 = vmul.f32 %v490_v1, %v1036_v7  ;;  %v477_v34 = vand.u32 2147483648, %v465_v59 }
  0xc0   : > { %v428_v0 = vsub.f32 1.0, %v427_v57  ;;  %v503_v6 = vadd.f32 0.4994258, %v502_v60  ;;  %v475_v37 = vand.u32 2147483647, %v465_v59  ;;  %vm471_vm10 = vweird.f32 %v465_v59 }
  0xc1   : > { %v776_v17 = vclamps-f32 %v400_v4, 1.0  ;;  %v492_v26 = vadd.f32 0.18741608, %v491_v16  ;;  %v454_v39 = vadd.f32 1.1283791, %v453_v22  ;;  %v478_v44 = vor.u32 1.1754944e-38, %v477_v34 }
  0xc2   : > { %v429_v5 = vmul.f32 %v862_v51, %v428_v0  ;;  %v504_v9 = vmul.f32 %v503_v6, %v1036_v7  ;;  %vm476_vm12 = vcmp.eq.f32.partialorder %v475_v37, 8.507059e+37  ;;  %v531_v4 = vld [vmem:[#allocation2] sm:$0xff]  ;;  %v532_v6 = vld [vmem:[#allocation2 + $0x8] sm:$0xff] }
  0xc3   : > { %v523_v29 = vadd.f32 1.0, %v776_v17  ;;  %v493_v41 = vmul.f32 %v492_v26, %v1036_v7  ;;  %v455_v19 = vmul.f32 %v454_v39, %v1002_v38 }
  0xc4   : > { %v430_v8 = vadd.f32 %v862_v51, %v429_v5  ;;  %v505_v20 = vadd.f32 1.0, %v504_v9 }
  0xc5   : > { %v864_v21 = vpop.eup %863  ;;  %v527_v42 = vmul.f32 %v523_v29, %v355_v31  ;;  %v494_v48 = vadd.f32 1.1283791, %v493_v41 }
  0xc6   : > { %v434_v18 = vsel %vm433_vm7, %v862_v51, %v430_v8  ;;  %v467_v25 = vmul.f32 %v864_v21, %v465_v59  ;;  %865 = vrcp.f32 %v505_v20  ;;  %vm472_vm9 = vweird.f32 %v864_v21  ;;  %v858_v8 = vld [vmem:[%s1100_s4] ss:$0 sm:$0xff] }
  0xc7   : > { %v439_v23 = vsel %vm436_vm8, %v438_v14, %v434_v18  ;;  %vm473_vm11 = vmor %vm471_vm10, %vm472_vm9  ;;  %v517_v50 = vand.u32 2147483648, %v505_v20  ;;  %v515_v7 = vand.u32 2147483647, %v505_v20  ;;  %vm511_vm14 = vweird.f32 %v505_v20  ;;  %v533_v14 = vld [vmem:[#allocation2 + $0x10] sm:$0xff]  ;;  %v534_v18 = vld [vmem:[#allocation2 + $0x18] sm:$0xff] }
  0xc8   : > { %v440_v24 = vmul.f32 %v439_v23, %v415_v12  ;;  %v468_v30 = vsub.f32 1.0, %v467_v25  ;;  %v495_v56 = vmul.f32 %v494_v48, %v1029_v62 }
  0xc9   : > { %v518_v55 = vor.u32 1.1754944e-38, %v517_v50  ;;  %vm516_vm1 = vcmp.eq.f32.partialorder %v515_v7, 8.507059e+37 }
  0xca   : > { %v777_v27 = vclamps-f32 %v440_v24, 1.0  ;;  %v469_v36 = vmul.f32 %v864_v21, %v468_v30 }
  0xcc   : > { %v524_v35 = vadd.f32 1.0, %v777_v27  ;;  %v866_v40 = vpop.eup %865  ;;  %v470_v43 = vadd.f32 %v864_v21, %v469_v36 }
  0xcd   : > { %v507_v45 = vmul.f32 %v866_v40, %v505_v20  ;;  %vm512_vm13 = vweird.f32 %v866_v40 }
  0xce   : > { %v528_v49 = vmul.f32 %v524_v35, %v356_v32  ;;  %v474_v11 = vsel %vm473_vm11, %v864_v21, %v470_v43  ;;  %vm513_vm15 = vmor %vm511_vm14, %vm512_vm13 }
  0xcf   : > { %v479_v47 = vsel %vm476_vm12, %v478_v44, %v474_v11  ;;  %v508_v15 = vsub.f32 1.0, %v507_v45 }
  0xd0   : > { %v535_v46 = vpack.c.bf16 %v528_v49, %v527_v42  ;;  %v480_v51 = vmul.f32 %v479_v47, %v455_v19 }
  0xd1   : > { %v509_v53 = vmul.f32 %v866_v40, %v508_v15 }
  0xd2   : > { %609 = vmatmul.bf16.vlgmr.msra.gmra.mxu1 %v535_v46  ;;  %v778_v57 = vclamps-f32 %v480_v51, 1.0 }
  0xd3   : > { %v510_v54 = vadd.f32 %v866_v40, %v509_v53 }
  0xd4   : > { %v525_v61 = vadd.f32 1.0, %v778_v57 }
  0xd5   : > { %v514_v58 = vsel %vm513_vm15, %v866_v40, %v510_v54 }
  0xd6   : > { %v519_v59 = vsel %vm516_vm1, %v518_v55, %v514_v58  ;;  %v529_v1 = vmul.f32 %v525_v61, %v357_v63 }
  0xd7   : > { %v520_v38 = vmul.f32 %v519_v59, %v495_v56 }
  0xd9   : > { %v779_v60 = vclamps-f32 %v520_v38, 1.0 }
  0xdb   : > { %v526_v0 = vadd.f32 1.0, %v779_v60 }
  0xdd   : > { %v530_v2 = vmul.f32 %v526_v0, %v358_v28 }
  0xdf   : > { %v536_v3 = vpack.c.bf16 %v530_v2, %v529_v1 }
  0xe1   : > { %614 = vmatmul.bf16.vlgmr.msra.gmra.mxu2 %v536_v3 }
 0x14f   : > { %v610_v5 = vpop.f32.mrf.mxu1 }
 0x150   : > { %v620_v62 = vadd.f32 %v610_v5, %v531_v4 }
 0x152   : > { %624 = vst.msk [vmem:[#allocation2] sm:$0xff] %vm298_vm0, %v620_v62 }
 0x157   : > { %v612_v9 = vpop.f32.mrf.mxu1 }
 0x158   : > { %v621_v10 = vadd.f32 %v612_v9, %v532_v6 }
 0x159   : > { %v631_v33 = vld [vmem:[#allocation2] sm:$0xff] }
 0x15a   : > { %v639_v52 = vadd.f32 %v858_v8, %v631_v33  ;;  %625 = vst.msk [vmem:[#allocation2 + $0x8] sm:$0xff] %vm298_vm0, %v621_v10 }
 0x15c   : > { %643 = vst.msk [vmem:[%s291_s8] sm:$0xff] %vm298_vm0, %v639_v52 }
 0x161   : > { %v632_v12 = vld [vmem:[#allocation2 + $0x8] sm:$0xff] }
 0x162   : > { %v640_v13 = vadd.f32 %v858_v8, %v632_v12 }
 0x164   : > { %644 = vst.msk [vmem:[%s291_s8 + $0x8] sm:$0xff] %vm298_vm0, %v640_v13  ;;  %v615_v16 = vpop.f32.mrf.mxu2 }
 0x165   : > { %v622_v17 = vadd.f32 %v615_v16, %v533_v14 }
 0x167   : > { %626 = vst.msk [vmem:[#allocation2 + $0x10] sm:$0xff] %vm298_vm0, %v622_v17 }
 0x16c   : > { %v617_v20 = vpop.f32.mrf.mxu2 }
 0x16d   : > { %v623_v21 = vadd.f32 %v617_v20, %v534_v18 }
 0x16e   : > { %v633_v23 = vld [vmem:[#allocation2 + $0x10] sm:$0xff] }
 0x16f   : > { %v641_v24 = vadd.f32 %v858_v8, %v633_v23  ;;  %627 = vst.msk [vmem:[#allocation2 + $0x18] sm:$0xff] %vm298_vm0, %v623_v21 }
 0x171   : > { %645 = vst.msk [vmem:[%s291_s8 + $0x10] sm:$0xff] %vm298_vm0, %v641_v24 }
 0x176   : > { %v634_v25 = vld [vmem:[#allocation2 + $0x18] sm:$0xff] }
 0x177   : > { %v642_v22 = vadd.f32 %v858_v8, %v634_v25 }
 0x179   : > { %646 = vst.msk [vmem:[%s291_s8 + $0x18] sm:$0xff] %vm298_vm0, %v642_v22 }
 0x17a PF: > { %s15_s20 = sadd.s32 1, %s889_s20   ;;  %s1102_s18 = smov %s885_s19 }
 0x17b   : > { %p12_p5 = scmp.ge.s32.totalorder %s15_s20, 4   ;;  %s1103_s19 = smov %s1105_s21 }
 0x17d   :  { %14 = sbr.rel (!%p12_p5) target bundleno = 2 (0x2), region = 87 }

</bundles_post_ra>
